<compile_context>
chip_gen: v5e
topology: v5e:2x2
jax: 0.10.0
libtpu: 0.0.40
codegen_flags: <defaults>
</compile_context>

<pallas_src>
import jax
import jax.numpy as jnp
from jax.experimental import pallas as pl
from jax.experimental.pallas import tpu as pltpu


def _round_up(v, m):
    return (v + m - 1) // m * m


def kgnn_kernel(x_ref, dst_oh_ref, src_ohw_ref,
                w_emb_ref, w_cat0_ref, w_cat1_ref, bias_ref,
                out_ref):
    # Dense weighted adjacency on the MXU (replaces the XLA scatter-add):
    #   adj[i, j] = sum_e [dst[e] == i] * w[e] * [src[e] == j]
    adj = jnp.dot(dst_oh_ref[...], src_ohw_ref[...],
                  preferred_element_type=jnp.float32)                        # (Np, Np)

    # node embedding: Linear(in_channels -> hid)
    h = jnp.dot(x_ref[...], w_emb_ref[...],
                preferred_element_type=jnp.float32) + bias_ref[0:1, :]        # (Np, hid)

    # ---- GraphConv layer 0 + folded BN(eval) + ReLU (single fused matmul) ----
    agg = jnp.dot(adj, h, preferred_element_type=jnp.float32)
    z = jnp.concatenate([agg, h], axis=-1)                                    # (Np, 2*hid)
    h = jnp.maximum(
        jnp.dot(z, w_cat0_ref[...], preferred_element_type=jnp.float32)
        + bias_ref[1:2, :], 0.0)

    # ---- GraphConv layer 1 + folded BN(eval) + ReLU ----
    agg = jnp.dot(adj, h, preferred_element_type=jnp.float32)
    z = jnp.concatenate([agg, h], axis=-1)
    h = jnp.maximum(
        jnp.dot(z, w_cat1_ref[...], preferred_element_type=jnp.float32)
        + bias_ref[2:3, :], 0.0)

    out_ref[...] = h


@jax.jit
def kgnn_forward(x, edge_index, edge_attr, prepped):
    """x: (N, C_in) f32; edge_index: (2, E) i32; edge_attr: (E, 1) f32."""
    N = x.shape[0]
    E = edge_index.shape[1]
    hid = prepped["w_emb"].shape[1]

    # Pad node dim to a sublane multiple (8) and edge dim to a lane multiple (128)
    # so the incidence matmul uses aligned tiles. Padding is semantics-preserving:
    # padded edges have weight 0 and endpoints == n_pad (never match a node id),
    # padded nodes have zero features and zero adjacency columns.
    n_pad = _round_up(max(N, 8), 8)
    e_pad = _round_up(max(E, 128), 128)

    ew = jnp.zeros((e_pad,), jnp.float32).at[:E].set(
        edge_attr.reshape(-1).astype(jnp.float32))
    src = jnp.full((e_pad,), n_pad, edge_index.dtype).at[:E].set(edge_index[0])
    dst = jnp.full((e_pad,), n_pad, edge_index.dtype).at[:E].set(edge_index[1])
    xp = jnp.zeros((n_pad, x.shape[1]), jnp.float32).at[:N].set(x.astype(jnp.float32))

    # Glue: weighted one-hot incidence matrices (elementwise compares only, no scatter).
    node_ids = jnp.arange(n_pad, dtype=edge_index.dtype)
    dst_oh_t = (node_ids[:, None] == dst[None, :]).astype(jnp.float32)             # (Np, Ep)
    src_oh_w = (src[:, None] == node_ids[None, :]).astype(jnp.float32) * ew[:, None]  # (Ep, Np)

    operands = (
        xp, dst_oh_t, src_oh_w,
        prepped["w_emb"], prepped["w_cat0"], prepped["w_cat1"], prepped["bias_pack"],
    )

    out = pl.pallas_call(
        kgnn_kernel,
        out_shape=jax.ShapeDtypeStruct((n_pad, hid), jnp.float32),
        in_specs=[pl.BlockSpec(memory_space=pltpu.MemorySpace.VMEM)] * len(operands),
        out_specs=pl.BlockSpec(memory_space=pltpu.MemorySpace.VMEM),
    )(*operands)
    return out[:N]


def prepare_params(params):
    """Fold BN (eval) + lin_rel bias into the weights; pre-concat rel/root; pack biases."""
    hid = params["w_emb"].shape[1]
    prepped = {"w_emb": params["w_emb"]}
    shifts = [params["b_emb"]]
    for li in range(2):
        scale = params[f"bn{li}_scale"]                      # (1, hid)
        w_rel = params[f"w_rel{li}"] * scale                 # scale output columns
        w_root = params[f"w_root{li}"] * scale
        prepped[f"w_cat{li}"] = jnp.concatenate([w_rel, w_root], axis=0)   # (2*hid, hid)
        shifts.append(params[f"b_rel{li}"] * scale + params[f"bn{li}_shift"])
    pad = jnp.zeros((8 - len(shifts), hid), jnp.float32)
    prepped["bias_pack"] = jnp.concatenate(shifts + [pad], axis=0)          # (8, hid)
    return prepped


def init_params(key, in_channels, hid_channels):
    """Deterministic synthetic parameters (same shapes as the torch module)."""
    ks = jax.random.split(key, 8)
    eps = 1e-5

    def lin_w(k, cin, cout):
        # already transposed to (in, out) for x @ W
        return jax.random.normal(k, (cin, cout), jnp.float32) * 0.1

    params = {
        "w_emb": lin_w(ks[0], in_channels, hid_channels),
        "b_emb": jax.random.normal(ks[1], (1, hid_channels), jnp.float32) * 0.1,
    }
    for li, (kw, kb, kr) in enumerate([(ks[2], ks[3], ks[4]), (ks[5], ks[6], ks[7])]):
        params[f"w_rel{li}"] = lin_w(kw, hid_channels, hid_channels)
        params[f"b_rel{li}"] = jax.random.normal(kb, (1, hid_channels), jnp.float32) * 0.1
        params[f"w_root{li}"] = lin_w(kr, hid_channels, hid_channels)
        # BatchNorm (eval): gamma, beta, running_mean=0, running_var=1 -> scale/shift
        gamma = jnp.full((1, hid_channels), 1.0, jnp.float32) + 0.01 * li
        beta = jnp.full((1, hid_channels), 0.05, jnp.float32)
        running_mean = jnp.zeros((1, hid_channels), jnp.float32)
        running_var = jnp.ones((1, hid_channels), jnp.float32)
        scale = gamma / jnp.sqrt(running_var + eps)
        shift = beta - running_mean * scale
        params[f"bn{li}_scale"] = scale
        params[f"bn{li}_shift"] = shift
    return params


if __name__ == "__main__":
    key = jax.random.PRNGKey(0)
    k_x, k_ei, k_ea, k_p = jax.random.split(key, 4)

    N = 16            # nodes (small graph)
    E = 48            # edges
    in_channels = 4   # node feature dim
    hid_channels = 32

    x = jax.random.normal(k_x, (N, in_channels), jnp.float32)
    edge_index = jax.random.randint(k_ei, (2, E), 0, N, dtype=jnp.int32)
    edge_attr = jax.random.uniform(k_ea, (E, 1), jnp.float32)
    batch = jnp.zeros((N,), jnp.int32)  # unused by forward(), kept for signature parity

    params = init_params(k_p, in_channels, hid_channels)
    prepped = prepare_params(params)

    node_x = kgnn_forward(x, edge_index, edge_attr, prepped)
    jax.block_until_ready(node_x)

    # lightweight sanity check against a pure-JAX reference (unfused parameters)
    ew = edge_attr.reshape(-1)
    adj = jnp.zeros((N, N)).at[edge_index[1], edge_index[0]].add(ew)
    h = x @ params["w_emb"] + params["b_emb"]
    for li in range(2):
        agg = adj @ h
        h = agg @ params[f"w_rel{li}"] + params[f"b_rel{li}"] + h @ params[f"w_root{li}"]
        h = jnp.maximum(h * params[f"bn{li}_scale"] + params[f"bn{li}_shift"], 0.0)
    assert node_x.shape == (N, hid_channels)
    assert jnp.allclose(node_x, h, atol=1e-4, rtol=1e-4), "mismatch vs reference"

    print("KERNEL_OK")
</pallas_src>

<mosaic_0001>
module attributes {stable_mosaic.version = 11 : i64} {
  func.func @kgnn_kernel(%arg0: memref<16x4xf32, #tpu.memory_space<vmem>>, %arg1: memref<16x128xf32, #tpu.memory_space<vmem>>, %arg2: memref<128x16xf32, #tpu.memory_space<vmem>>, %arg3: memref<4x32xf32, #tpu.memory_space<vmem>>, %arg4: memref<64x32xf32, #tpu.memory_space<vmem>>, %arg5: memref<64x32xf32, #tpu.memory_space<vmem>>, %arg6: memref<8x32xf32, #tpu.memory_space<vmem>>, %arg7: memref<16x32xf32, #tpu.memory_space<vmem>>) attributes {dimension_semantics = [], scalar_prefetch = 0 : i64, scratch_operands = 0 : i64, tpu.core_type = #tpu.core_type<tc>} {
    %c0 = arith.constant 0 : index
    %c0_0 = arith.constant 0 : index
    %0 = vector.load %arg1[%c0, %c0_0] : memref<16x128xf32, #tpu.memory_space<vmem>>, vector<16x128xf32>
    %c0_1 = arith.constant 0 : index
    %c0_2 = arith.constant 0 : index
    %1 = vector.load %arg2[%c0_1, %c0_2] : memref<128x16xf32, #tpu.memory_space<vmem>>, vector<128x16xf32>
    %cst = arith.constant dense<0.000000e+00> : vector<16x16xf32>
    %2 = tpu.matmul %0, %1, %cst {dimension_numbers = #tpu.dot_dimension_numbers<[1], [0], [0], [1], [0, 0, 1, 1], [], []>} : vector<16x128xf32>, vector<128x16xf32>, vector<16x16xf32> -> vector<16x16xf32>
    %c0_3 = arith.constant 0 : index
    %c0_4 = arith.constant 0 : index
    %3 = vector.load %arg0[%c0_3, %c0_4] : memref<16x4xf32, #tpu.memory_space<vmem>>, vector<16x4xf32>
    %c0_5 = arith.constant 0 : index
    %c0_6 = arith.constant 0 : index
    %4 = vector.load %arg3[%c0_5, %c0_6] : memref<4x32xf32, #tpu.memory_space<vmem>>, vector<4x32xf32>
    %cst_7 = arith.constant dense<0.000000e+00> : vector<16x32xf32>
    %5 = tpu.matmul %3, %4, %cst_7 {dimension_numbers = #tpu.dot_dimension_numbers<[1], [0], [0], [1], [0, 0, 1, 1], [], []>} : vector<16x4xf32>, vector<4x32xf32>, vector<16x32xf32> -> vector<16x32xf32>
    %c0_8 = arith.constant 0 : index
    %c0_9 = arith.constant 0 : index
    %6 = vector.load %arg6[%c0_8, %c0_9] : memref<8x32xf32, #tpu.memory_space<vmem>>, vector<1x32xf32>
    %7 = vector.broadcast %6 : vector<1x32xf32> to vector<16x32xf32>
    %8 = arith.addf %5, %7 : vector<16x32xf32>
    %cst_10 = arith.constant dense<0.000000e+00> : vector<16x32xf32>
    %9 = tpu.matmul %2, %8, %cst_10 {dimension_numbers = #tpu.dot_dimension_numbers<[1], [0], [0], [1], [0, 0, 1, 1], [], []>} : vector<16x16xf32>, vector<16x32xf32>, vector<16x32xf32> -> vector<16x32xf32>
    %10 = tpu.concatenate %9, %8 in 1 : vector<16x32xf32>, vector<16x32xf32> -> vector<16x64xf32>
    %c0_11 = arith.constant 0 : index
    %c0_12 = arith.constant 0 : index
    %11 = vector.load %arg4[%c0_11, %c0_12] : memref<64x32xf32, #tpu.memory_space<vmem>>, vector<64x32xf32>
    %cst_13 = arith.constant dense<0.000000e+00> : vector<16x32xf32>
    %12 = tpu.matmul %10, %11, %cst_13 {dimension_numbers = #tpu.dot_dimension_numbers<[1], [0], [0], [1], [0, 0, 1, 1], [], []>} : vector<16x64xf32>, vector<64x32xf32>, vector<16x32xf32> -> vector<16x32xf32>
    %c1 = arith.constant 1 : index
    %c0_14 = arith.constant 0 : index
    %13 = vector.load %arg6[%c1, %c0_14] : memref<8x32xf32, #tpu.memory_space<vmem>>, vector<1x32xf32>
    %14 = vector.broadcast %13 : vector<1x32xf32> to vector<16x32xf32>
    %15 = arith.addf %12, %14 : vector<16x32xf32>
    %cst_15 = arith.constant 0.000000e+00 : f32
    %16 = vector.broadcast %cst_15 : f32 to vector<16x32xf32>
    %17 = arith.maximumf %15, %16 : vector<16x32xf32>
    %cst_16 = arith.constant dense<0.000000e+00> : vector<16x32xf32>
    %18 = tpu.matmul %2, %17, %cst_16 {dimension_numbers = #tpu.dot_dimension_numbers<[1], [0], [0], [1], [0, 0, 1, 1], [], []>} : vector<16x16xf32>, vector<16x32xf32>, vector<16x32xf32> -> vector<16x32xf32>
    %19 = tpu.concatenate %18, %17 in 1 : vector<16x32xf32>, vector<16x32xf32> -> vector<16x64xf32>
    %c0_17 = arith.constant 0 : index
    %c0_18 = arith.constant 0 : index
    %20 = vector.load %arg5[%c0_17, %c0_18] : memref<64x32xf32, #tpu.memory_space<vmem>>, vector<64x32xf32>
    %cst_19 = arith.constant dense<0.000000e+00> : vector<16x32xf32>
    %21 = tpu.matmul %19, %20, %cst_19 {dimension_numbers = #tpu.dot_dimension_numbers<[1], [0], [0], [1], [0, 0, 1, 1], [], []>} : vector<16x64xf32>, vector<64x32xf32>, vector<16x32xf32> -> vector<16x32xf32>
    %c2 = arith.constant 2 : index
    %c0_20 = arith.constant 0 : index
    %22 = vector.load %arg6[%c2, %c0_20] : memref<8x32xf32, #tpu.memory_space<vmem>>, vector<1x32xf32>
    %23 = vector.broadcast %22 : vector<1x32xf32> to vector<16x32xf32>
    %24 = arith.addf %21, %23 : vector<16x32xf32>
    %cst_21 = arith.constant 0.000000e+00 : f32
    %25 = vector.broadcast %cst_21 : f32 to vector<16x32xf32>
    %26 = arith.maximumf %24, %25 : vector<16x32xf32>
    %c0_22 = arith.constant 0 : index
    %c0_23 = arith.constant 0 : index
    %27 = vector.load %arg7[%c0_22, %c0_23] : memref<16x32xf32, #tpu.memory_space<vmem>>, vector<16x32xf32>
    tpu.vector_store %arg7[%c0_22, %c0_23], %26 {strides = array<i32>} : memref<16x32xf32, #tpu.memory_space<vmem>>, vector<16x32xf32>,
    return
  }
}

</mosaic_0001>

<bundles_post_ra>
// kernel: kgnn_forward.1
= control target key start
LH: loop header
LB: loop body
LE: loop exit
PB: predicated region body
PF: predicated region fallthrough
CT: control target
= control target key end

     0   :  { %vm80_vm0 = vcmask 1043456   ;;  %vm73_vm1 = vcmask 31744   ;;  %s515_s0 = inlined_call_operand.vmem [shape: f32[16,4], index: 0, kind: input, shape index: {}]   ;;  %s516_s1 = inlined_call_operand.vmem [shape: f32[16,128], index: 1, kind: input, shape index: {}]   ;;  %s517_s2 = inlined_call_operand.vmem [shape: f32[128,16], index: 2, kind: input, shape index: {}]   ;;  %s518_s3 = inlined_call_operand.vmem [shape: f32[4,32], index: 3, kind: input, shape index: {}]   ;;  %s519_s4 = inlined_call_operand.vmem [shape: f32[64,32], index: 4, kind: input, shape index: {}]   ;;  %s520_s5 = inlined_call_operand.vmem [shape: f32[64,32], index: 5, kind: input, shape index: {}]   ;;  %s521_s6 = inlined_call_operand.vmem [shape: f32[8,32], index: 6, kind: input, shape index: {}]   ;;  %s522_s7 = inlined_call_operand.hbm [shape: f32[16,32], index: 7, kind: output, shape index: {}]  }
   0x1   :  { %v44_v0 = vld [vmem:[%s517_s2 + $0x78] sm:$0xff]  ;;  %v43_v1 = vld [vmem:[%s517_s2 + $0x70] sm:$0xff]  ;;  %v70_v2 = vld [vmem:[%s518_s3] sm:$0xf] }
   0x2   :  { %45 = vmatpush.msra.mxu0 %v44_v0  ;;  %v42_v3 = vld [vmem:[%s517_s2 + $0x68] sm:$0xff]  ;;  %284 = vmatpush.msk.msra.mxu1 %vm80_vm0, %v70_v2  ;;  %v68_v4 = vld [vmem:[%s515_s0] sm:$0xff]  ;;  %v40_v6 = vld [vmem:[%s517_s2 + $0x58] sm:$0xff] }
   0x3   :  { %285 = vmatmul.msk.f32.vlgmr.msra.gmra.mxu1 %vm73_vm1, %v68_v4  ;;  %v41_v5 = vld [vmem:[%s517_s2 + $0x60] sm:$0xff]  ;;  %v39_v7 = vld [vmem:[%s517_s2 + $0x50] sm:$0xff]  ;;  %v69_v8 = vld [vmem:[%s515_s0 + $0x8] sm:$0xff] }
   0x4   :  { %46 = vmatpush.msra.mxu0 %v43_v1 }
   0x6   :  { %47 = vmatpush.msra.mxu0 %v42_v3 }
   0x8   :  { %48 = vmatpush.msra.mxu0 %v41_v5 }
   0x9   :  { %12 = vsyncpa [#allocation3], 0  ;;  %v38_v9 = vld [vmem:[%s517_s2 + $0x48] sm:$0xff]  ;;  %v37_v10 = vld [vmem:[%s517_s2 + $0x40] sm:$0xff]  ;;  %s328_s19 = smov 32   ;;  %vm107_vm2 = vcmask 130048  }
   0xa   :  { %49 = vmatpush.msra.mxu0 %v40_v6  ;;  %v36_v11 = vld [vmem:[%s517_s2 + $0x38] sm:$0xff]  ;;  %v35_v12 = vld [vmem:[%s517_s2 + $0x30] sm:$0xff]  ;;  %v34_v13 = vld [vmem:[%s517_s2 + $0x28] sm:$0xff]  ;;  %vm145_vm3 = vcmask 261120   ;;  %vm158_vm4 = vcmask 523264   ;;  %s272_s28 = sshll.u32 %s522_s7, 4  ;;  %s273_s28 = int_to_ptr.hbm [resolvable:$true] %s272_s28 }
   0xb   :  { %286 = vmatmul.msk.f32.gmra.mxu1 %vm73_vm1, %v69_v8  ;;  %v33_v14 = vld [vmem:[%s517_s2 + $0x20] sm:$0xff]  ;;  %v32_v15 = vld [vmem:[%s517_s2 + $0x18] sm:$0xff]  ;;  %v31_v16 = vld [vmem:[%s517_s2 + $0x10] sm:$0xff]  ;;  %s330_s29 = smov 128  }
   0xc   :  { %50 = vmatpush.msra.mxu0 %v39_v7  ;;  %v30_v17 = vld [vmem:[%s517_s2 + $0x8] sm:$0xff]  ;;  %v29_v18 = vld [vmem:[%s517_s2] sm:$0xff]  ;;  %v155_v28 = vld [vmem:[%s519_s4 + $0x38] sm:$0xff] }
   0xd   :  { %v27_v19 = vld [vmem:[%s516_s1] sm:$0xff]  ;;  %v28_v20 = vld [vmem:[%s516_s1 + $0x8] sm:$0xff]  ;;  %v154_v29 = vld [vmem:[%s519_s4 + $0x30] sm:$0xff]  ;;  %173 = vmatpush.msra.mxu3 %v155_v28 }
   0xe   :  { %51 = vmatpush.msra.mxu0 %v38_v9  ;;  %v299_v21 = vld [vmem:[%s521_s6] ss:$0 sm:$0xff]  ;;  %v153_v30 = vld [vmem:[%s519_s4 + $0x28] sm:$0xff]  ;;  %v151_v32 = vld [vmem:[%s519_s4 + $0x18] sm:$0xff] }
   0xf   :  { %174 = vmatpush.msra.mxu3 %v154_v29  ;;  %v152_v31 = vld [vmem:[%s519_s4 + $0x20] sm:$0xff]  ;;  %v150_v33 = vld [vmem:[%s519_s4 + $0x10] sm:$0xff]  ;;  %v149_v34 = vld [vmem:[%s519_s4 + $0x8] sm:$0xff] }
  0x10   :  { %52 = vmatpush.msra.mxu0 %v37_v10  ;;  %v148_v35 = vld [vmem:[%s519_s4] sm:$0xff]  ;;  %v230_v49 = vld [vmem:[%s520_s5 + $0x38] sm:$0xff]  ;;  %v229_v50 = vld [vmem:[%s520_s5 + $0x30] sm:$0xff] }
  0x11   :  { %175 = vmatpush.msra.mxu3 %v153_v30  ;;  %v300_v42 = vld [vmem:[%s521_s6 + $0x1] ss:$0 sm:$0xff]  ;;  %v228_v51 = vld [vmem:[%s520_s5 + $0x28] sm:$0xff]  ;;  %v226_v53 = vld [vmem:[%s520_s5 + $0x18] sm:$0xff] }
  0x12   :  { %53 = vmatpush.msra.mxu0 %v36_v11  ;;  %v227_v52 = vld [vmem:[%s520_s5 + $0x20] sm:$0xff]  ;;  %v225_v54 = vld [vmem:[%s520_s5 + $0x10] sm:$0xff]  ;;  %v224_v55 = vld [vmem:[%s520_s5 + $0x8] sm:$0xff] }
  0x13   :  { %176 = vmatpush.msra.mxu3 %v152_v31  ;;  %v223_v56 = vld [vmem:[%s520_s5] sm:$0xff]  ;;  %s329_s5 = smov [#allocation2]  }
  0x14   :  { %54 = vmatpush.msra.mxu0 %v35_v12  ;;  %v301_v63 = vld [vmem:[%s521_s6 + $0x2] ss:$0 sm:$0xff]  ;;  %s270_s25 = sshll.u32 %s329_s5, 4  ;;  %s331_s6 = smov 8   ;;  %s271_s25 = int_to_ptr.vmem [resolvable:$true] %s270_s25 }
  0x15   :  { %177 = vmatpush.msra.mxu3 %v151_v32 }
  0x16   :  { %55 = vmatpush.msra.mxu0 %v34_v13 }
  0x17   :  { %178 = vmatpush.msra.mxu3 %v150_v33 }
  0x18   :  { %56 = vmatpush.msra.mxu0 %v33_v14 }
  0x19   :  { %179 = vmatpush.msra.mxu3 %v149_v34 }
  0x1a   :  { %57 = vmatpush.msra.mxu0 %v32_v15 }
  0x1b   :  { %180 = vmatpush.msra.mxu3 %v148_v35 }
  0x1c   :  { %58 = vmatpush.msra.mxu0 %v31_v16 }
  0x1e   :  { %59 = vmatpush.msra.mxu0 %v30_v17 }
  0x20   :  { %60 = vmatpush.msra.mxu0 %v29_v18 }
  0x21   :  { %61 = vmatmul.f32.vlgmr.msra.gmra.mxu0 %v27_v19 }
  0x29   :  { %64 = vmatmul.f32.gmra.mxu0 %v28_v20 }
  0x80   :  { %v101_v22 = vpop.f32.mrf.mxu1 }
  0x81   :  { %v102_v23 = vadd.f32 %v299_v21, %v101_v22 }
  0x83   :  { %139 = vrot.lane.b32.xlu0 %v102_v23, %s328_s19 }
  0x88   :  { %v104_v24 = vpop.f32.mrf.mxu1 }
  0x89   :  { %v105_v25 = vadd.f32 %v299_v21, %v104_v24 }
  0x8b   :  { %128 = vmatpush.msra.mxu2 %v105_v25  ;;  %141 = vrot.lane.b32.xlu0 %v105_v25, %s328_s19 }
  0x8d   :  { %129 = vmatpush.msra.mxu2 %v102_v23 }
  0x8f   :  { %247 = vmatpush.msrb.mxu2 %v230_v49 }
  0x91   :  { %248 = vmatpush.msrb.mxu2 %v229_v50 }
  0x93   :  { %249 = vmatpush.msrb.mxu2 %v228_v51 }
  0x95   :  { %250 = vmatpush.msrb.mxu2 %v227_v52 }
  0x97   :  { %251 = vmatpush.msrb.mxu2 %v226_v53 }
  0x99   :  { %252 = vmatpush.msrb.mxu2 %v225_v54 }
  0x9b   :  { %253 = vmatpush.msrb.mxu2 %v224_v55 }
  0x9d   :  { %254 = vmatpush.msrb.mxu2 %v223_v56 }
  0x9e   :  { %v62_v26 = vpop.f32.mrf.mxu0 }
  0x9f   :  { %287 = vmatmul.msk.f32.vlgmr.msra.gmra.mxu2 %vm107_vm2, %v62_v26 }
  0xa6   :  { %v65_v27 = vpop.f32.mrf.mxu0 }
  0xa7   :  { %288 = vmatmul.msk.f32.gmra.mxu2 %vm107_vm2, %v65_v27 }
  0xf5   :  { %v140_v36 = vpop.permute.xlu0 %139 }
  0xfd   :  { %v142_v39 = vpop.permute.xlu0 %141 }
 0x122   :  { %v131_v37 = vpop.f32.mrf.mxu2 }
 0x123   :  { %v146_v38 = vsel %vm145_vm3, %v131_v37, %v140_v36 }
 0x124   :  { %289 = vmatmul.msk.f32.vlgmr.msra.gmra.mxu3 %vm158_vm4, %v146_v38 }
 0x12a   :  { %v134_v40 = vpop.f32.mrf.mxu2 }
 0x12b   :  { %v147_v41 = vsel %vm145_vm3, %v134_v40, %v142_v39 }
 0x12c   :  { %290 = vmatmul.msk.f32.gmra.mxu3 %vm158_vm4, %v147_v41 }
 0x1a7   :  { %v182_v43 = vpop.f32.mrf.mxu3 }
 0x1a8   :  { %v183_v44 = vadd.f32 %v300_v42, %v182_v43 }
 0x1aa   :  { %v188_v45 = vmax.f32 %v183_v44, 0.0 }
 0x1ac   :  { %215 = vrot.lane.b32.xlu1 %v188_v45, %s328_s19 }
 0x1af   :  { %v185_v46 = vpop.f32.mrf.mxu3 }
 0x1b0   :  { %v186_v47 = vadd.f32 %v300_v42, %v185_v46 }
 0x1b2   :  { %v189_v48 = vmax.f32 %v186_v47, 0.0 }
 0x1b4   :  { %217 = vrot.lane.b32.xlu1 %v189_v48, %s328_s19  ;;  %204 = vmatpush.msrb.mxu1 %v189_v48 }
 0x1b6   :  { %205 = vmatpush.msrb.mxu1 %v188_v45 }
 0x1b7   :  { %291 = vmatmul.msk.f32.vlgmr.msrb.gmra.mxu1 %vm107_vm2, %v62_v26 }
 0x1bf   :  { %292 = vmatmul.msk.f32.gmra.mxu1 %vm107_vm2, %v65_v27 }
 0x21e   :  { %v216_v57 = vpop.permute.xlu1 %215 }
 0x226   :  { %v218_v60 = vpop.permute.xlu1 %217 }
 0x234   :  { %v207_v58 = vpop.f32.mrf.mxu1 }
 0x235   :  { %v221_v59 = vsel %vm145_vm3, %v207_v58, %v216_v57 }
 0x236   :  { %293 = vmatmul.msk.f32.vlgmr.msrb.gmra.mxu2 %vm158_vm4, %v221_v59 }
 0x23c   :  { %v210_v61 = vpop.f32.mrf.mxu1 }
 0x23d   :  { %v222_v62 = vsel %vm145_vm3, %v210_v61, %v218_v60 }
 0x23e   :  { %294 = vmatmul.msk.f32.gmra.mxu2 %vm158_vm4, %v222_v62 }
 0x2b9   :  { %v256_v0 = vpop.f32.mrf.mxu2 }
 0x2ba   :  { %v257_v1 = vadd.f32 %v301_v63, %v256_v0 }
 0x2bc   :  { %v262_v2 = vmax.f32 %v257_v1, 0.0 }
 0x2be   :  { %264 = vst.msk [vmem:[#allocation2] sm:$0xff] %vm145_vm3, %v262_v2 }
 0x2c1   :  { %v259_v3 = vpop.f32.mrf.mxu2 }
 0x2c2   :  { %v260_v4 = vadd.f32 %v301_v63, %v259_v3 }
 0x2c4   :  { %v263_v5 = vmax.f32 %v260_v4, 0.0 }
 0x2c6   :  { %265 = vst.msk [vmem:[#allocation2 + $0x8] sm:$0xff] %vm145_vm3, %v263_v5 }
 0x2c7   :  { %278 = dma.vmem_to_hbm [thread:$0]  %s271_s25, 256, %s273_s28, [#allocation3], %s330_s29, %s330_s29, %s331_s6  }
 0x2c8   :  { %326 = dma.done.wait [#allocation3], 256  }
 0x2c9   :  { %327 = vsyncadd [#allocation3], 4294967040 }
 0x2ca   :  { %283 = vsyncpa [#allocation3], 1 }

</bundles_post_ra>
